<compile_context>
chip_gen: v6e
topology: v6e:2x2x1
jax: 0.10.0
libtpu: 0.0.40
codegen_flags: <defaults>
</compile_context>

<pallas_src>
import functools

import jax
import jax.numpy as jnp
from jax.experimental import pallas as pl
from jax.experimental.pallas import tpu as pltpu


def _round_up(a, b):
    return -(-a // b) * b


def ste_sampler_kernel(x_ref, u_ref, tri_ref, o_ref, *, m_valid, chunk, mxu_dtype):
    tile_n, m_pad = x_ref.shape
    # Static chunk schedule (last chunk may be a ragged multiple of 128).
    chunks = [(s, min(chunk, m_pad - s)) for s in range(0, m_pad, chunk)]

    u = u_ref[...].astype(jnp.float32)                       # (tile_n, 1) in [0, 1)

    # Pass 1: row totals, using the same (bf16-rounded) values the MXU sees.
    total = jnp.zeros((tile_n, 1), jnp.float32)
    for s, c in chunks:
        xc = x_ref[:, s:s + c].astype(mxu_dtype).astype(jnp.float32)
        total = total + jnp.sum(xc, axis=-1, keepdims=True)
    t = u * total                                            # threshold in [0, total)

    # Pass 2: chunked inclusive cumsum on the MXU (bf16 in, f32 accumulate)
    # plus a running carry; sampled index = #{j : cumsum[j] <= t}.
    carry = jnp.zeros((tile_n, 1), jnp.float32)
    count = jnp.zeros((tile_n, 1), jnp.int32)
    for s, c in chunks:
        xc = x_ref[:, s:s + c].astype(mxu_dtype)             # (tile_n, c)
        tri_c = tri_ref[:c, :c]                              # static, 128-aligned slice
        cs = jnp.dot(xc, tri_c, preferred_element_type=jnp.float32) + carry
        count = count + jnp.sum((cs <= t).astype(jnp.int32), axis=-1, keepdims=True)
        carry = cs[:, c - 1:c]

    idx = jnp.minimum(count, m_valid - 1)                    # guard t ~= total rounding
    lane = jax.lax.broadcasted_iota(jnp.int32, (tile_n, m_pad), 1)
    one_hot = jnp.where((lane == idx) & (total > 0.0), 1.0, 0.0)
    o_ref[...] = one_hot.astype(o_ref.dtype)


@jax.jit
def straight_through_sampler(x, key):
    """Forward pass of StraightThroughSampler.

    x:   (N, M) array of per-row probabilities (need not be normalized).
    key: jax PRNG key used to draw one uniform per row.
    Returns an (N, M) one-hot array with the dtype of x.
    """
    n, m = x.shape
    out_dtype = x.dtype
    mxu_dtype = jnp.bfloat16      # 0/1 tri is exact in bf16; ~3x MXU throughput vs f32

    # Lane-dense category axis; chunked cumsum with a (chunk, chunk) tri.
    m_pad = _round_up(m, 128)
    chunk = min(256, m_pad)

    # Row tile from a ~2 MiB-per-x-block VMEM budget (cap 2048, multiple of 8),
    # then balance tiles so row padding waste stays small.
    itemsize = jnp.dtype(x.dtype).itemsize
    budget = 2 * 1024 * 1024
    tile_n = max(8, min(2048, budget // max(m_pad * itemsize, 1)))
    tile_n -= tile_n % 8
    n_pad8 = _round_up(n, 8)
    tile_n = min(tile_n, n_pad8)
    grid_n = pl.cdiv(n_pad8, tile_n)
    tile_n = _round_up(-(-n_pad8 // grid_n), 8)
    n_pad = grid_n * tile_n

    x_p = x
    if (n_pad, m_pad) != (n, m):
        x_p = jnp.pad(x, ((0, n_pad - n), (0, m_pad - m)))

    # One uniform per row -- the only randomness the kernel consumes.
    u = jax.random.uniform(key, (n_pad, 1), dtype=jnp.float32)

    # (chunk, chunk) upper-triangular ones (tri[k, j] = 1 if k <= j), bf16,
    # DMA'd once and resident across grid steps via a constant index_map.
    tri = (jax.lax.broadcasted_iota(jnp.int32, (chunk, chunk), 0)
           <= jax.lax.broadcasted_iota(jnp.int32, (chunk, chunk), 1)).astype(mxu_dtype)

    kernel = functools.partial(ste_sampler_kernel, m_valid=m, chunk=chunk,
                               mxu_dtype=mxu_dtype)

    cost = pl.CostEstimate(
        flops=2 * n_pad * m_pad * chunk,
        transcendentals=0,
        bytes_accessed=(2 * n_pad * m_pad * itemsize          # x in + one-hot out
                        + n_pad * 4                           # uniforms
                        + chunk * chunk * 2),                 # tri (bf16)
    )

    out = pl.pallas_call(
        kernel,
        out_shape=jax.ShapeDtypeStruct((n_pad, m_pad), out_dtype),
        grid=(grid_n,),
        in_specs=[
            pl.BlockSpec((tile_n, m_pad), lambda i: (i, 0)),  # x row tile
            pl.BlockSpec((tile_n, 1), lambda i: (i, 0)),      # per-row uniforms
            pl.BlockSpec((chunk, chunk), lambda i: (0, 0)),   # tri (resident)
        ],
        out_specs=pl.BlockSpec((tile_n, m_pad), lambda i: (i, 0)),
        compiler_params=pltpu.CompilerParams(
            dimension_semantics=("parallel",),                # megacore on v7x
            vmem_limit_bytes=32 * 1024 * 1024,
        ),
        cost_estimate=cost,
    )(x_p, u, tri)

    if (n_pad, m_pad) != (n, m):
        out = out[:n, :m]
    return out


if __name__ == "__main__":
    key = jax.random.PRNGKey(0)
    k1, k2, k3, k4 = jax.random.split(key, 4)

    # Case 1: small, lane-aligned (single chunk, single row tile).
    N, M = 8, 128
    probs = jax.nn.softmax(jax.random.normal(k1, (N, M), dtype=jnp.float32), axis=-1)
    out = jax.block_until_ready(straight_through_sampler(probs, k2))
    assert out.shape == (N, M)
    assert out.dtype == probs.dtype
    assert bool(jnp.all((out == 0.0) | (out == 1.0)))
    assert bool(jnp.all(jnp.sum(out, axis=-1) == 1.0))

    # Case 2: non-128-multiple M -> exercises chunked cumsum (256 + ragged 128),
    # row/column padding, and the wrapper-side slice-back.
    N2, M2 = 20, 300
    probs2 = jax.nn.softmax(jax.random.normal(k3, (N2, M2), dtype=jnp.float32), axis=-1)
    out2 = jax.block_until_ready(straight_through_sampler(probs2, k4))
    assert out2.shape == (N2, M2)
    assert out2.dtype == probs2.dtype
    assert bool(jnp.all((out2 == 0.0) | (out2 == 1.0)))
    assert bool(jnp.all(jnp.sum(out2, axis=-1) == 1.0))

    print("KERNEL_OK")
</pallas_src>

<mosaic_0001>
module attributes {stable_mosaic.version = 11 : i64} {
  func.func @ste_sampler_kernel(%arg0: i32, %arg1: memref<8x128xf32, #tpu.memory_space<vmem>>, %arg2: memref<8x1xf32, #tpu.memory_space<vmem>>, %arg3: memref<128x128xbf16, #tpu.memory_space<vmem>>, %arg4: memref<8x128xf32, #tpu.memory_space<vmem>>) attributes {dimension_semantics = [#tpu.dimension_semantics<parallel>], iteration_bounds = array<i64: 1>, scalar_prefetch = 0 : i64, scratch_operands = 0 : i64, tpu.core_type = #tpu.core_type<tc>, window_params = [{transform_indices = @transform_0, window_bounds = array<i64: 8, 128>}, {transform_indices = @transform_1, window_bounds = array<i64: 8, 1>}, {pipeline_mode = #tpu.pipeline_mode<synchronous>, transform_indices = @transform_2, window_bounds = array<i64: 128, 128>}, {transform_indices = @transform_3, window_bounds = array<i64: 8, 128>}]} {
    %c0 = arith.constant 0 : index
    %c0_0 = arith.constant 0 : index
    %0 = vector.load %arg2[%c0, %c0_0] : memref<8x1xf32, #tpu.memory_space<vmem>>, vector<8x1xf32>
    %cst = arith.constant 0.000000e+00 : f32
    %1 = vector.broadcast %cst : f32 to vector<8x1xf32>
    %c0_1 = arith.constant 0 : index
    %c0_2 = arith.constant 0 : index
    %2 = vector.load %arg1[%c0_1, %c0_2] : memref<8x128xf32, #tpu.memory_space<vmem>>, vector<8x128xf32>
    %3 = arith.truncf %2 : vector<8x128xf32> to vector<8x128xbf16>
    %4 = arith.extf %3 : vector<8x128xbf16> to vector<8x128xf32>
    %cst_3 = arith.constant dense<0.000000e+00> : vector<8xf32>
    %5 = vector.multi_reduction <add>, %4, %cst_3 [1] : vector<8x128xf32> to vector<8xf32>
    %6 = vector.shape_cast %5 : vector<8xf32> to vector<8x1xf32>
    %7 = arith.addf %1, %6 : vector<8x1xf32>
    %8 = arith.mulf %0, %7 : vector<8x1xf32>
    %cst_4 = arith.constant 0.000000e+00 : f32
    %9 = vector.broadcast %cst_4 : f32 to vector<8x1xf32>
    %c0_i32 = arith.constant 0 : i32
    %10 = vector.broadcast %c0_i32 : i32 to vector<8x1xi32>
    %c0_5 = arith.constant 0 : index
    %c0_6 = arith.constant 0 : index
    %11 = vector.load %arg1[%c0_5, %c0_6] : memref<8x128xf32, #tpu.memory_space<vmem>>, vector<8x128xf32>
    %12 = arith.truncf %11 : vector<8x128xf32> to vector<8x128xbf16>
    %c0_7 = arith.constant 0 : index
    %c0_8 = arith.constant 0 : index
    %13 = vector.load %arg3[%c0_7, %c0_8] : memref<128x128xbf16, #tpu.memory_space<vmem>>, vector<128x128xbf16>
    %cst_9 = arith.constant dense<0.000000e+00> : vector<8x128xf32>
    %14 = tpu.matmul %12, %13, %cst_9 {dimension_numbers = #tpu.dot_dimension_numbers<[1], [0], [0], [1], [0, 0, 1, 1], [], []>} : vector<8x128xbf16>, vector<128x128xbf16>, vector<8x128xf32> -> vector<8x128xf32>
    %15 = vector.broadcast %9 : vector<8x1xf32> to vector<8x128xf32>
    %16 = arith.addf %14, %15 : vector<8x128xf32>
    %17 = vector.broadcast %8 : vector<8x1xf32> to vector<8x128xf32>
    %18 = arith.cmpf ole, %16, %17 : vector<8x128xf32>
    %19 = arith.extui %18 : vector<8x128xi1> to vector<8x128xi32>
    %cst_10 = arith.constant dense<0> : vector<8xi32>
    %20 = vector.multi_reduction <add>, %19, %cst_10 [1] : vector<8x128xi32> to vector<8xi32>
    %21 = vector.shape_cast %20 : vector<8xi32> to vector<8x1xi32>
    %22 = arith.addi %10, %21 : vector<8x1xi32>
    %c127_i32 = arith.constant 127 : i32
    %23 = vector.broadcast %c127_i32 : i32 to vector<8x1xi32>
    %24 = arith.minsi %22, %23 : vector<8x1xi32>
    %25 = tpu.iota {dimensions = array<i32: 1>} : vector<8x128xi32>
    %26 = vector.broadcast %24 : vector<8x1xi32> to vector<8x128xi32>
    %27 = arith.cmpi eq, %25, %26 : vector<8x128xi32>
    %cst_11 = arith.constant 0.000000e+00 : f32
    %28 = vector.broadcast %cst_11 : f32 to vector<8x1xf32>
    %29 = arith.cmpf ogt, %7, %28 : vector<8x1xf32>
    %30 = vector.broadcast %29 : vector<8x1xi1> to vector<8x128xi1>
    %31 = arith.andi %27, %30 : vector<8x128xi1>
    %cst_12 = arith.constant 1.000000e+00 : f32
    %cst_13 = arith.constant 0.000000e+00 : f32
    %32 = vector.broadcast %cst_12 : f32 to vector<8x128xf32>
    %33 = vector.broadcast %cst_13 : f32 to vector<8x128xf32>
    %34 = arith.select %31, %32, %33 : vector<8x128xi1>, vector<8x128xf32>
    %c0_14 = arith.constant 0 : index
    %c0_15 = arith.constant 0 : index
    %35 = vector.load %arg4[%c0_14, %c0_15] : memref<8x128xf32, #tpu.memory_space<vmem>>, vector<8x128xf32>
    tpu.vector_store %arg4[%c0_14, %c0_15], %34 {strides = array<i32>} : memref<8x128xf32, #tpu.memory_space<vmem>>, vector<8x128xf32>,
    return
  }
  func.func @transform_0(%arg0: i32) -> (i32, i32) {
    %c0_i32 = arith.constant 0 : i32
    %c0_i32_0 = arith.constant 0 : i32
    return %arg0, %c0_i32 : i32, i32
  }
  func.func @transform_1(%arg0: i32) -> (i32, i32) {
    %c0_i32 = arith.constant 0 : i32
    %c0_i32_0 = arith.constant 0 : i32
    return %arg0, %c0_i32 : i32, i32
  }
  func.func @transform_2(%arg0: i32) -> (i32, i32) {
    %c0_i32 = arith.constant 0 : i32
    %c0_i32_0 = arith.constant 0 : i32
    %c0_i32_1 = arith.constant 0 : i32
    return %c0_i32, %c0_i32_0 : i32, i32
  }
  func.func @transform_3(%arg0: i32) -> (i32, i32) {
    %c0_i32 = arith.constant 0 : i32
    %c0_i32_0 = arith.constant 0 : i32
    return %arg0, %c0_i32 : i32, i32
  }
}

</mosaic_0001>

<bundles_post_ra>
// kernel: straight_through_sampler.1
= control target key start
LH: loop header
LB: loop body
LE: loop exit
PB: predicated region body
PF: predicated region fallthrough
CT: control target
= control target key end

     0   :  { %v244_v2 = vmov 0.0   ;;  %vm245_vm0 = vmmov 0   ;;  %s311_s0 = inlined_call_operand.vmem [shape: f32[8,128], index: 0, kind: input, shape index: {}]   ;;  %s312_s1 = inlined_call_operand.vmem [shape: f32[8,1], index: 1, kind: input, shape index: {}]   ;;  %s313_s2 = inlined_call_operand.vmem [shape: bf16[128,128], index: 2, kind: input, shape index: {}]   ;;  %s314_s3 = inlined_call_operand.hbm [shape: f32[8,128], index: 3, kind: output, shape index: {}]  }
   0x1   :  { %v17_v0 = vld [vmem:[%s311_s0] sm:$0xff]  ;;  %189 = vmatprep.subr.bf16.mxu0 %v244_v2  ;;  %v214_v3 = vld [vmem:[%s313_s2 + $0x38] sm:$0xff]   ;;  %205 = vmatprep.mubr.msk.bf16.mxu0 %vm245_vm0, %v244_v2  ;;  %v215_v5 = vld [vmem:[%s313_s2 + $0x30] sm:$0xff]  }
   0x2   :  { %v18_v1 = vpack.c.bf16 %v17_v0, %v17_v0  ;;  %190 = vmatpush3.bf16.msra.mxu0 %v214_v3  ;;  %v216_v6 = vld [vmem:[%s313_s2 + $0x28] sm:$0xff]  }
   0x3   :  { %191 = vmatprep.subr.bf16.mxu0 %v244_v2 }
   0x4   :  { %v19_v4 = vunpack.c.l.bf16 %v18_v1 }
   0x6   :  { %20 = vadd.xlane.f32.xlu0 %v19_v4  ;;  %192 = vmatpush3.bf16.msra.mxu0 %v215_v5 }
   0x7   :  { %193 = vmatprep.subr.bf16.mxu0 %v244_v2 }
   0x8   :  { %8 = vsyncpa [#allocation3], 0  ;;  %v217_v7 = vld [vmem:[%s313_s2 + $0x20] sm:$0xff]   ;;  %v218_v8 = vld [vmem:[%s313_s2 + $0x18] sm:$0xff]   ;;  %v246_v9 = vmov 0   ;;  %v149_v28 = vlaneseq }
   0x9   :  { %213 = vset.pattern.permute.xlu0 %v246_v9  ;;  %v219_v10 = vld [vmem:[%s313_s2 + $0x10] sm:$0xff]   ;;  %v220_v11 = vld [vmem:[%s313_s2 + $0x8] sm:$0xff]   ;;  %v221_v12 = vld [vmem:[%s313_s2] sm:$0xff]  }
   0xa   :  { %194 = vmatpush3.bf16.msra.mxu0 %v216_v6  ;;  %v16_v13 = vld [vmem:[%s312_s1] sm:$0xff]  ;;  %v150_v33 = vand.u32 127, %v149_v28  ;;  %s247_s1 = smov [#allocation2]  }
   0xb   :  { %195 = vmatprep.subr.bf16.mxu0 %v244_v2  ;;  %s164_s2 = sshll.u32 %s247_s1, 4  ;;  %s165_s2 = int_to_ptr.vmem [resolvable:$true] %s164_s2 }
   0xc   :  { %s222_s4 = scalar_lea.vmem %s165_s2, 128  ;;  %p227_p1 = scmp.lt.s32.totalorder %s165_s2, %s165_s2 }
   0xd   :  { %p223_p0 = scmp.ne.s32.totalorder %s165_s2, %s222_s4  ;;  %p228_p2 = scmp.lt.s32.totalorder %s222_s4, %s222_s4 }
   0xe   :  { %196 = vmatpush3.bf16.msra.mxu0 %v217_v7 }
   0xf   :  { %197 = vmatprep.subr.bf16.mxu0 %v244_v2  ;;  %p229_p3 = por %p228_p2, %p227_p1 }
  0x11   :  { %p230_p4 = pnand %p229_p3, %p223_p0 }
  0x12   :  { %198 = vmatpush3.bf16.msra.mxu0 %v218_v8 }
  0x13   :  { %199 = vmatprep.subr.bf16.mxu0 %v244_v2 }
  0x16   :  { %200 = vmatpush3.bf16.msra.mxu0 %v219_v10 }
  0x17   :  { %201 = vmatprep.subr.bf16.mxu0 %v244_v2 }
  0x1a   :  { %202 = vmatpush3.bf16.msra.mxu0 %v220_v11 }
  0x1b   :  { %203 = vmatprep.subr.bf16.mxu0 %v244_v2 }
  0x1e   :  { %204 = vmatpush3.bf16.msra.mxu0 %v221_v12 }
  0x21   :  { %206 = vmatmul.mubr.bf16.vlgmr.msra.gmra.mxu0 %v18_v1 }
  0x8f   :  { %v21_v14 = vpop.xlane.xlu0 %20 }
  0x90   :  { %v23_v15 = vmul.f32 %v21_v14, %v16_v13  ;;  %vm152_vm3 = vcmp.gt.f32.partialorder %v21_v14, 0.0 }
  0x92   :  { %130 = vperm.xlu0 %213, %v23_v15  }
  0xe1   :  { %v122_v16 = vpop.f32.mrf.mxu0 }
  0xe3   :  { %v207_v17 = vpop.f32.mrf.mxu0 }
  0xe5   :  { %v125_v18 = vpop.f32.mrf.mxu0 }
  0xe7   :  { %v208_v19 = vpop.f32.mrf.mxu0 }
 0x10d   :  { %v131_v20 = vpop.permute.xlu0 %130 }
 0x10e   :  { %vm133_vm1 = vcmp.le.f32.partialorder %v122_v16, %v131_v20 }
 0x10f   :  { %v134_v21 = vsel %vm133_vm1, 1, %v246_v9 }
 0x110   :  { %v136_v22 = vshrl.u32 %v134_v21, 16  ;;  %v135_v24 = vand.u32 65535, %v134_v21 }
 0x112   :  { %v138_v23 = vcvt.s32.f32 %v136_v22  ;;  %v137_v25 = vcvt.s32.f32 %v135_v24 }
 0x114   :  { %141 = vadd.xlane.f32.xlu1 %v138_v23 }
 0x118   :  { %139 = vadd.xlane.f32.xlu1 %v137_v25 }
 0x19d   :  { %v142_v26 = vpop.xlane.xlu1 %141 }
 0x19e   :  { %v144_v27 = vcvt.f32.s32 %v142_v26 }
 0x1a0   :  { %v145_v30 = vshll.u32 %v144_v27, 16 }
 0x1a1   :  { %v140_v29 = vpop.xlane.xlu1 %139 }
 0x1a2   :  { %v143_v31 = vcvt.f32.s32 %v140_v29 }
 0x1a4   :  { %v146_v32 = vadd.s32 %v145_v30, %v143_v31 }
 0x1a6   :  { %vm147_vm2 = vcmp.lt.s32.totalorder %v146_v32, 127 }
 0x1a7   :  { %v148_v34 = vsel %vm147_vm2, %v146_v32, 127 }
 0x1a8   :  { %vm151_vm4 = vcmp.eq.s32.totalorder %v150_v33, %v148_v34 }
 0x1a9   :  { %vm155_vm5 = vmand %vm151_vm4, %vm152_vm3 }
 0x1aa   :  { %v156_v35 = vsel %vm155_vm5, 1.0, %v244_v2 }
 0x1ab   :  { %157 = vst [vmem:[#allocation2] sm:$0xff] %v156_v35 }
 0x1ac   :  { %233 = shalt.err (!%p230_p4)
}
 0x1ad   :  { %167 = dma.vmem_to_hbm [thread:$0]  %s165_s2, 128, %s314_s3, [#allocation3]  }
 0x1ae   :  { %242 = dma.done.wait [#allocation3], 128  }
 0x1af   :  { %243 = vsyncadd [#allocation3], 4294967168 }
 0x1b0   :  { %171 = vsyncpa [#allocation3], 1 }

</bundles_post_ra>
